<compile_context>
chip_gen: v7x
topology: tpu7x:2x2x1
jax: 0.10.0
libtpu: 0.0.40
codegen_flags: <defaults>
</compile_context>

<pallas_src>
import functools

import jax
import jax.numpy as jnp
from jax.experimental import pallas as pl
from jax.experimental.pallas import tpu as pltpu


def _mad_kernel(x_ref, w_rec_ref, b_rec_ref, w_pred_ref, b_pred_ref, o_ref,
                acc_rec_ref, acc_pred_ref, *, scaling_coeff):
    """Fused Mad forward on one (Mp, tn) output tile, reducing over k.

    rec  = gelu(x @ W_rec + b_rec)      # reconstruction-branch stand-in
    pred =      x @ W_pred + b_pred     # prediction-branch stand-in
    out  = scaling_coeff * rec + pred   # exact Mad.forward combine
    """
    k = pl.program_id(1)

    @pl.when(k == 0)
    def _():
        acc_rec_ref[...] = jnp.zeros_like(acc_rec_ref)
        acc_pred_ref[...] = jnp.zeros_like(acc_pred_ref)

    x = x_ref[...]  # bf16 (Mp, tk)
    acc_rec_ref[...] += jnp.dot(x, w_rec_ref[...],
                                preferred_element_type=jnp.float32)
    acc_pred_ref[...] += jnp.dot(x, w_pred_ref[...],
                                 preferred_element_type=jnp.float32)

    # Epilogue only on the last reduction step.
    @pl.when(k == pl.num_programs(1) - 1)
    def _():
        rec = jax.nn.gelu(acc_rec_ref[...] + b_rec_ref[...])
        pred = acc_pred_ref[...] + b_pred_ref[...]
        o_ref[...] = (scaling_coeff * rec + pred).astype(o_ref.dtype)


def _pick_tile(d, target, granule=128):
    """Largest multiple of `granule` that divides d and is <= target."""
    if d <= granule or d % granule != 0:
        return d
    best = granule
    t = granule
    lim = min(d, target)
    while t <= lim:
        if d % t == 0:
            best = t
        t += granule
    return best


def mad_forward(x, w_rec, b_rec, w_pred, b_pred, scaling_coeff=0.1,
                tile_n=None, tile_k=None):
    """x: (T, C, H, W).  Returns same shape, x.dtype."""
    T, C, H, W = x.shape
    M = T
    D = C * H * W
    out_dtype = x.dtype
    out_bytes = jnp.dtype(out_dtype).itemsize

    # Stream weights / activations as bf16; accumulate in f32 on the MXU.
    x2d = x.reshape(M, D).astype(jnp.bfloat16)
    w_rec_c = w_rec.astype(jnp.bfloat16)
    w_pred_c = w_pred.astype(jnp.bfloat16)
    b_rec_c = b_rec.reshape(1, D).astype(jnp.float32)
    b_pred_c = b_pred.reshape(1, D).astype(jnp.float32)

    # Pad rows to a sublane-friendly multiple (16 covers bf16 packing).
    Mp = max(16, ((M + 15) // 16) * 16)
    if Mp != M:
        x2d = jnp.pad(x2d, ((0, Mp - M), (0, 0)))

    # Tile sizes: multiples of 128 dividing D, sized for v7x's 64 MiB VMEM.
    tn = tile_n if tile_n is not None else _pick_tile(D, 1024)
    tk = tile_k if tile_k is not None else _pick_tile(D, 512)
    assert D % tn == 0 and D % tk == 0, (D, tn, tk)
    num_n, num_k = D // tn, D // tk

    kernel = functools.partial(_mad_kernel, scaling_coeff=float(scaling_coeff))

    # Scheduler hint: 2 matmuls (2*M*D*D flops each), weight-dominated bytes.
    cost = pl.CostEstimate(
        flops=4 * Mp * D * D,
        transcendentals=Mp * D,  # gelu tanh path
        bytes_accessed=(2 * D * D * 2            # two bf16 weights
                        + num_n * Mp * D * 2     # x restreamed per n tile
                        + Mp * D * out_bytes     # output
                        + 2 * D * 4),            # biases
    )

    # VMEM: double-buffered x / 2 weights / 2 biases / out + 2 f32 accumulators.
    vmem_est = (2 * Mp * tk * 2
                + 2 * 2 * tk * tn * 2
                + 2 * 2 * tn * 4
                + 2 * Mp * tn * out_bytes
                + 2 * Mp * tn * 4)
    vmem_limit = int(min(max(4 * vmem_est, 8 << 20), 64 << 20))

    out2d = pl.pallas_call(
        kernel,
        out_shape=jax.ShapeDtypeStruct((Mp, D), out_dtype),
        grid_spec=pltpu.PrefetchScalarGridSpec(
            num_scalar_prefetch=0,
            grid=(num_n, num_k),                       # (j over N, k over K)
            in_specs=[
                pl.BlockSpec((Mp, tk), lambda j, k: (0, k)),   # x
                pl.BlockSpec((tk, tn), lambda j, k: (k, j)),   # W_rec
                pl.BlockSpec((1, tn),  lambda j, k: (0, j)),   # b_rec
                pl.BlockSpec((tk, tn), lambda j, k: (k, j)),   # W_pred
                pl.BlockSpec((1, tn),  lambda j, k: (0, j)),   # b_pred
            ],
            out_specs=pl.BlockSpec((Mp, tn), lambda j, k: (0, j)),
            scratch_shapes=[pltpu.VMEM((Mp, tn), jnp.float32),   # acc_rec
                            pltpu.VMEM((Mp, tn), jnp.float32)],  # acc_pred
        ),
        compiler_params=pltpu.CompilerParams(
            dimension_semantics=("parallel", "arbitrary"),
            vmem_limit_bytes=vmem_limit,
        ),
        cost_estimate=cost,
    )(x2d, w_rec_c, b_rec_c, w_pred_c, b_pred_c)

    return out2d[:M].reshape(T, C, H, W).astype(out_dtype)


def _reference(x, w_rec, b_rec, w_pred, b_pred, scaling_coeff):
    """Pure-JAX reference with the same bf16 input rounding as the kernel."""
    T, C, H, W = x.shape
    D = C * H * W
    x2d = x.reshape(T, D).astype(jnp.bfloat16).astype(jnp.float32)
    wr = w_rec.astype(jnp.bfloat16).astype(jnp.float32)
    wp = w_pred.astype(jnp.bfloat16).astype(jnp.float32)
    br = b_rec.reshape(1, D).astype(jnp.float32)
    bp = b_pred.reshape(1, D).astype(jnp.float32)
    rec = jax.nn.gelu(
        jnp.dot(x2d, wr, precision=jax.lax.Precision.HIGHEST) + br)
    pred = jnp.dot(x2d, wp, precision=jax.lax.Precision.HIGHEST) + bp
    return (scaling_coeff * rec + pred).reshape(T, C, H, W)


if __name__ == "__main__":
    # Small shapes consistent with shape_in_reconstruction=(T, C, H, W),
    # e.g. the module's example (10, 1, 64, 64) scaled down.
    T, C, H, W = 10, 2, 16, 16         # D = 512; T=10 exercises row padding
    D = C * H * W
    scaling_coeff = 0.1

    key = jax.random.PRNGKey(0)
    kx, kwr, kbr, kwp, kbp = jax.random.split(key, 5)

    x = jax.random.normal(kx, (T, C, H, W), dtype=jnp.float32)
    w_rec = jax.random.normal(kwr, (D, D), dtype=jnp.float32) * (1.0 / D ** 0.5)
    b_rec = jax.random.normal(kbr, (1, D), dtype=jnp.float32) * 0.02
    w_pred = jax.random.normal(kwp, (D, D), dtype=jnp.float32) * (1.0 / D ** 0.5)
    b_pred = jax.random.normal(kbp, (1, D), dtype=jnp.float32) * 0.02

    # Small tiles so the (N, K) grid / accumulator / epilogue paths are
    # exercised (grid = (2, 2) at this toy size).
    out = mad_forward(x, w_rec, b_rec, w_pred, b_pred, scaling_coeff,
                      tile_n=256, tile_k=256)
    out = jax.block_until_ready(out)

    ref = _reference(x, w_rec, b_rec, w_pred, b_pred, scaling_coeff)
    assert out.shape == (T, C, H, W), out.shape
    assert jnp.allclose(out, ref, atol=2e-3, rtol=2e-3), (
        "mismatch vs reference: max abs err "
        f"{float(jnp.max(jnp.abs(out - ref)))}")

    print("KERNEL_OK")
</pallas_src>

<mosaic_0001>
module attributes {stable_mosaic.version = 11 : i64} {
  func.func @_mad_kernel(%arg0: i32, %arg1: i32, %arg2: memref<16x256xbf16, #tpu.memory_space<vmem>>, %arg3: memref<256x256xbf16, #tpu.memory_space<vmem>>, %arg4: memref<1x256xf32, #tpu.memory_space<vmem>>, %arg5: memref<256x256xbf16, #tpu.memory_space<vmem>>, %arg6: memref<1x256xf32, #tpu.memory_space<vmem>>, %arg7: memref<16x256xf32, #tpu.memory_space<vmem>>, %arg8: memref<16x256xf32, #tpu.memory_space<vmem>>, %arg9: memref<16x256xf32, #tpu.memory_space<vmem>>) attributes {dimension_semantics = [#tpu.dimension_semantics<parallel>, #tpu.dimension_semantics<arbitrary>], iteration_bounds = array<i64: 2, 2>, scalar_prefetch = 0 : i64, scratch_operands = 2 : i64, tpu.core_type = #tpu.core_type<tc>, window_params = [{transform_indices = @transform_0, window_bounds = array<i64: 16, 256>}, {transform_indices = @transform_1, window_bounds = array<i64: 256, 256>}, {transform_indices = @transform_2, window_bounds = array<i64: 1, 256>}, {transform_indices = @transform_3, window_bounds = array<i64: 256, 256>}, {transform_indices = @transform_4, window_bounds = array<i64: 1, 256>}, {transform_indices = @transform_5, window_bounds = array<i64: 16, 256>}]} {
    %c0_i32 = arith.constant 0 : i32
    %0 = arith.cmpi eq, %arg1, %c0_i32 : i32
    %1 = arith.extui %0 : i1 to i32
    %c0_i32_0 = arith.constant 0 : i32
    %2 = arith.cmpi ne, %1, %c0_i32_0 : i32
    scf.if %2 {
      %cst_16 = arith.constant 0.000000e+00 : f32
      %17 = vector.broadcast %cst_16 : f32 to vector<16x256xf32>
      %c0_17 = arith.constant 0 : index
      %c0_18 = arith.constant 0 : index
      %18 = vector.load %arg8[%c0_17, %c0_18] : memref<16x256xf32, #tpu.memory_space<vmem>>, vector<16x256xf32>
      tpu.vector_store %arg8[%c0_17, %c0_18], %17 {strides = array<i32>} : memref<16x256xf32, #tpu.memory_space<vmem>>, vector<16x256xf32>,
      %cst_19 = arith.constant 0.000000e+00 : f32
      %19 = vector.broadcast %cst_19 : f32 to vector<16x256xf32>
      %c0_20 = arith.constant 0 : index
      %c0_21 = arith.constant 0 : index
      %20 = vector.load %arg9[%c0_20, %c0_21] : memref<16x256xf32, #tpu.memory_space<vmem>>, vector<16x256xf32>
      tpu.vector_store %arg9[%c0_20, %c0_21], %19 {strides = array<i32>} : memref<16x256xf32, #tpu.memory_space<vmem>>, vector<16x256xf32>,
    } else {
    }
    %c0 = arith.constant 0 : index
    %c0_1 = arith.constant 0 : index
    %3 = vector.load %arg2[%c0, %c0_1] : memref<16x256xbf16, #tpu.memory_space<vmem>>, vector<16x256xbf16>
    %c0_2 = arith.constant 0 : index
    %c0_3 = arith.constant 0 : index
    %4 = vector.load %arg8[%c0_2, %c0_3] : memref<16x256xf32, #tpu.memory_space<vmem>>, vector<16x256xf32>
    %c0_4 = arith.constant 0 : index
    %c0_5 = arith.constant 0 : index
    %5 = vector.load %arg3[%c0_4, %c0_5] : memref<256x256xbf16, #tpu.memory_space<vmem>>, vector<256x256xbf16>
    %cst = arith.constant dense<0.000000e+00> : vector<16x256xf32>
    %6 = tpu.matmul %3, %5, %cst {dimension_numbers = #tpu.dot_dimension_numbers<[1], [0], [0], [1], [0, 0, 1, 1], [], []>} : vector<16x256xbf16>, vector<256x256xbf16>, vector<16x256xf32> -> vector<16x256xf32>
    %7 = arith.addf %4, %6 : vector<16x256xf32>
    %c0_6 = arith.constant 0 : index
    %c0_7 = arith.constant 0 : index
    %8 = vector.load %arg8[%c0_6, %c0_7] : memref<16x256xf32, #tpu.memory_space<vmem>>, vector<16x256xf32>
    tpu.vector_store %arg8[%c0_6, %c0_7], %7 {strides = array<i32>} : memref<16x256xf32, #tpu.memory_space<vmem>>, vector<16x256xf32>,
    %c0_8 = arith.constant 0 : index
    %c0_9 = arith.constant 0 : index
    %9 = vector.load %arg9[%c0_8, %c0_9] : memref<16x256xf32, #tpu.memory_space<vmem>>, vector<16x256xf32>
    %c0_10 = arith.constant 0 : index
    %c0_11 = arith.constant 0 : index
    %10 = vector.load %arg5[%c0_10, %c0_11] : memref<256x256xbf16, #tpu.memory_space<vmem>>, vector<256x256xbf16>
    %cst_12 = arith.constant dense<0.000000e+00> : vector<16x256xf32>
    %11 = tpu.matmul %3, %10, %cst_12 {dimension_numbers = #tpu.dot_dimension_numbers<[1], [0], [0], [1], [0, 0, 1, 1], [], []>} : vector<16x256xbf16>, vector<256x256xbf16>, vector<16x256xf32> -> vector<16x256xf32>
    %12 = arith.addf %9, %11 : vector<16x256xf32>
    %c0_13 = arith.constant 0 : index
    %c0_14 = arith.constant 0 : index
    %13 = vector.load %arg9[%c0_13, %c0_14] : memref<16x256xf32, #tpu.memory_space<vmem>>, vector<16x256xf32>
    tpu.vector_store %arg9[%c0_13, %c0_14], %12 {strides = array<i32>} : memref<16x256xf32, #tpu.memory_space<vmem>>, vector<16x256xf32>,
    %c1_i32 = arith.constant 1 : i32
    %14 = arith.cmpi eq, %arg1, %c1_i32 : i32
    %15 = arith.extui %14 : i1 to i32
    %c0_i32_15 = arith.constant 0 : i32
    %16 = arith.cmpi ne, %15, %c0_i32_15 : i32
    scf.if %16 {
      %c0_16 = arith.constant 0 : index
      %c0_17 = arith.constant 0 : index
      %17 = vector.load %arg8[%c0_16, %c0_17] : memref<16x256xf32, #tpu.memory_space<vmem>>, vector<16x256xf32>
      %c0_18 = arith.constant 0 : index
      %c0_19 = arith.constant 0 : index
      %18 = vector.load %arg4[%c0_18, %c0_19] : memref<1x256xf32, #tpu.memory_space<vmem>>, vector<1x256xf32>
      %19 = vector.broadcast %18 : vector<1x256xf32> to vector<16x256xf32>
      %20 = arith.addf %17, %19 : vector<16x256xf32>
      %21 = arith.mulf %20, %20 : vector<16x256xf32>
      %22 = arith.mulf %20, %21 : vector<16x256xf32>
      %cst_20 = arith.constant 4.471500e-02 : f32
      %23 = vector.broadcast %cst_20 : f32 to vector<16x256xf32>
      %24 = arith.mulf %23, %22 : vector<16x256xf32>
      %25 = arith.addf %20, %24 : vector<16x256xf32>
      %cst_21 = arith.constant 0.797884583 : f32
      %26 = vector.broadcast %cst_21 : f32 to vector<16x256xf32>
      %27 = arith.mulf %26, %25 : vector<16x256xf32>
      %28 = math.tanh %27 : vector<16x256xf32>
      %cst_22 = arith.constant 1.000000e+00 : f32
      %29 = vector.broadcast %cst_22 : f32 to vector<16x256xf32>
      %30 = arith.addf %29, %28 : vector<16x256xf32>
      %cst_23 = arith.constant 5.000000e-01 : f32
      %31 = vector.broadcast %cst_23 : f32 to vector<16x256xf32>
      %32 = arith.mulf %31, %30 : vector<16x256xf32>
      %33 = arith.mulf %20, %32 : vector<16x256xf32>
      %c0_24 = arith.constant 0 : index
      %c0_25 = arith.constant 0 : index
      %34 = vector.load %arg9[%c0_24, %c0_25] : memref<16x256xf32, #tpu.memory_space<vmem>>, vector<16x256xf32>
      %c0_26 = arith.constant 0 : index
      %c0_27 = arith.constant 0 : index
      %35 = vector.load %arg6[%c0_26, %c0_27] : memref<1x256xf32, #tpu.memory_space<vmem>>, vector<1x256xf32>
      %36 = vector.broadcast %35 : vector<1x256xf32> to vector<16x256xf32>
      %37 = arith.addf %34, %36 : vector<16x256xf32>
      %cst_28 = arith.constant 1.000000e-01 : f32
      %38 = vector.broadcast %cst_28 : f32 to vector<16x256xf32>
      %39 = arith.mulf %38, %33 : vector<16x256xf32>
      %40 = arith.addf %39, %37 : vector<16x256xf32>
      %c0_29 = arith.constant 0 : index
      %c0_30 = arith.constant 0 : index
      %41 = vector.load %arg7[%c0_29, %c0_30] : memref<16x256xf32, #tpu.memory_space<vmem>>, vector<16x256xf32>
      tpu.vector_store %arg7[%c0_29, %c0_30], %40 {strides = array<i32>} : memref<16x256xf32, #tpu.memory_space<vmem>>, vector<16x256xf32>,
    } else {
    }
    return
  }
  func.func @transform_0(%arg0: i32, %arg1: i32) -> (i32, i32) {
    %c0_i32 = arith.constant 0 : i32
    %c0_i32_0 = arith.constant 0 : i32
    return %c0_i32, %arg1 : i32, i32
  }
  func.func @transform_1(%arg0: i32, %arg1: i32) -> (i32, i32) {
    %c0_i32 = arith.constant 0 : i32
    return %arg1, %arg0 : i32, i32
  }
  func.func @transform_2(%arg0: i32, %arg1: i32) -> (i32, i32) {
    %c0_i32 = arith.constant 0 : i32
    %c0_i32_0 = arith.constant 0 : i32
    return %c0_i32, %arg0 : i32, i32
  }
  func.func @transform_3(%arg0: i32, %arg1: i32) -> (i32, i32) {
    %c0_i32 = arith.constant 0 : i32
    return %arg1, %arg0 : i32, i32
  }
  func.func @transform_4(%arg0: i32, %arg1: i32) -> (i32, i32) {
    %c0_i32 = arith.constant 0 : i32
    %c0_i32_0 = arith.constant 0 : i32
    return %c0_i32, %arg0 : i32, i32
  }
  func.func @transform_5(%arg0: i32, %arg1: i32) -> (i32, i32) {
    %c0_i32 = arith.constant 0 : i32
    %c0_i32_0 = arith.constant 0 : i32
    return %c0_i32, %arg0 : i32, i32
  }
}

</mosaic_0001>

<bundles_post_ra>
// kernel: tpu_custom_call.1
= control target key start
LH: loop header
LB: loop body
LE: loop exit
PB: predicated region body
PF: predicated region fallthrough
CT: control target
= control target key end

     0   :  { %s2289_s0 = inlined_call_operand.hbm [shape: bf16[16,512], index: 0, kind: input, shape index: {}]   ;;  %s2290_s1 = inlined_call_operand.hbm [shape: bf16[512,512], index: 1, kind: input, shape index: {}]   ;;  %s2291_s2 = inlined_call_operand.vmem [shape: f32[1,512], index: 2, kind: input, shape index: {}]   ;;  %s2292_s3 = inlined_call_operand.hbm [shape: bf16[512,512], index: 3, kind: input, shape index: {}]   ;;  %s2293_s4 = inlined_call_operand.vmem [shape: f32[1,512], index: 4, kind: input, shape index: {}]   ;;  %s2294_s5 = inlined_call_operand.hbm [shape: f32[16,512], index: 5, kind: output, shape index: {}]  }
   0x1   :  { %2320 = sst [smem:[#allocation26_spill]] %s2290_s1 }
   0x2   :  { %2321 = sst [smem:[#allocation27_spill]] %s2293_s4 }
   0x3   :  { %2322 = sst [smem:[#allocation28_spill]] %s2294_s5 }
   0x4   :  { %10 = vsyncpa [#allocation5], 0 }
   0x5   :  { %12 = vsyncpa [#allocation5 + $0x1], 0 }
   0x6   :  { %13 = vsyncpa [#allocation8], 0 }
   0x7   :  { %15 = vsyncpa [#allocation8 + $0x1], 0 }
   0x8   :  { %16 = vsyncpa [#allocation6], 0 }
   0x9   :  { %18 = vsyncpa [#allocation6 + $0x1], 0  ;;  %s1795_s18 = smov 0   ;;  %s1797_s19 = smov 0  }
   0xa   :  { %s1799_s20 = smov 0   ;;  %s1801_s21 = smov 0  }
   0xb   :  { %s1803_s22 = smov 0   ;;  %s1805_s23 = smov 0  }
   0xc   :  { %s1807_s24 = smov 0   ;;  %s1809_s25 = smov 0  }
   0xd   :  { %s1811_s26 = smov 0   ;;  %s1813_s27 = smov 0  }
   0xe   :  { %s1815_s28 = smov 0   ;;  %s1817_s29 = smov 0  }
   0xf   :  { %s1819_s30 = smov 0   ;;  %s1821_s6 = smov 0  }
  0x10 LB: > { %2323 = sst [smem:[#allocation14_spill]] %s1700_s18  ;;  %s1864_s7 = sadd.s32 4294967295, %s1752_s6   ;;  %s1752_s6 = sphi %s1821_s6, %s24_s6   ;;  %s1748_s30 = sphi %s1819_s30, %s2375_s30   ;;  %s1744_s29 = sphi %s1817_s29, %s2374_s29   ;;  %s1740_s28 = sphi %s1815_s28, %s2373_s28   ;;  %s1736_s27 = sphi %s1813_s27, %s2384_s27   ;;  %s1732_s26 = sphi %s1811_s26, %s2383_s26   ;;  %s1728_s25 = sphi %s1809_s25, %s2382_s25   ;;  %s1724_s24 = sphi %s1807_s24, %s2381_s24   ;;  %s1720_s23 = sphi %s1805_s23, %s2371_s23   ;;  %s1716_s22 = sphi %s1803_s22, %s2380_s22   ;;  %s1712_s21 = sphi %s1801_s21, %s2379_s21   ;;  %s1708_s20 = sphi %s1799_s20, %s2369_s20   ;;  %s1704_s19 = sphi %s1797_s19, %s2378_s19   ;;  %s1700_s18 = sphi %s1795_s18, %s2377_s18  }
  0x11   : > { %2324 = sst [smem:[#allocation15_spill]] %s1708_s20  ;;  %s1162_s8 = sadd.s32 4294967294, %s1752_s6  }
  0x12   : > { %2325 = sst [smem:[#allocation16_spill]] %s1720_s23  ;;  %s33_s9 = sadd.s32 1, %s1744_s29 }
  0x13   : > { %2326 = sst [smem:[#allocation17_spill]] %s1736_s27  ;;  %p34_p0 = scmp.ge.s32.totalorder %s33_s9, 2 }
  0x14   : > { %2327 = sst [smem:[#allocation18_spill]] %s1744_s29  ;;  %s36_s10 = sadd.s32 1, %s1748_s30 }
  0x15   : > { %2328 = sst [smem:[#allocation19_spill]] %s1748_s30  ;;  %p2308_p1 = scmp.eq.s32.totalorder %s1752_s6, 0 }
  0x16   : > { %p2307_p2 = scmp.eq.s32.totalorder %s1864_s7, 0  ;;  %s2386_s9 = smov (%p34_p0, %s33_s9), 0 }
  0x17   : > { %2329 = sst [smem:[#allocation20_spill]] %s2386_s9  ;;  %s2388_s10 = smov (!%p34_p0, %s36_s10), %s1748_s30 }
  0x18   : > { %s71_s11 = sadd.s32 1, %s1720_s23  ;;  %p78_p3 = scmp.ne.s32.totalorder %s1720_s23, %s1716_s22 }
  0x19   : > { %p38_p4 = scmp.ge.s32.totalorder %s2388_s10, 2  ;;  %s1879_s12 = ssub.s32 %s1744_s29, %s2386_s9 }
  0x1a   : > { %p1883_p5 = por %p78_p3, %p2308_p1  ;;  %p84_p6 = scmp.ne.s32.totalorder %s1716_s22, %s1712_s21 }
  0x1b   : > { %s2390_s10 = smov (%p38_p4, %s2388_s10), 0  ;;  %s177_s15 = sadd.s32 1, %s1708_s20 }
  0x1c   : > { %2331 = sst [smem:[#allocation21_spill]] %s2390_s10  ;;  %p1892_p7 = por %p84_p6, %p2307_p2 }
  0x1d   : > { %s67_s16 = ssub.s32 %s1748_s30, %s2390_s10  ;;  %p187_p8 = scmp.ne.s32.totalorder %s1708_s20, %s1704_s19 }
  0x1e   : > { %s2332_s14 = scalar_select %p1892_p7, 1, 0 }
  0x1f   : > { %s68_s17 = sor.u32 %s67_s16, %s1879_s12  ;;  %p175_p9 = scmp.eq.s32.totalorder %s67_s16, 0 }
  0x20   : > { %p69_p10 = scmp.eq.s32.totalorder %s68_s17, 0  ;;  %p188_p11 = scmp.eq.s32.totalorder %s1864_s7, 3 }
  0x21   : > { %s1904_s21 = scalar_select %p175_p9, %s1708_s20, %s177_s15  }
  0x22   : > { %s1907_s9 = scalar_select %p69_p10, %s1720_s23, %s71_s11  }
  0x23   : > { %2333 = sst [smem:[#allocation22_spill]] %s1904_s21  ;;  %p1909_p12 = por %p188_p11, %p187_p8 }
  0x24   : > { %2334 = sst [smem:[#allocation23_spill]] %s1907_s9  ;;  %p193_p13 = scmp.ne.s32.totalorder %s1704_s19, %s1700_s18 }
  0x25   : > { %s2335_s5 = scalar_select %p1909_p12, 1, 0 }
  0x26   : > { %p194_p0 = scmp.eq.s32.totalorder %s1162_s8, 3  ;;  %p2306_p3 = scmp.lt.s32.totalorder %s1752_s6, 4 }
  0x27   : > { %2336 = sst [smem:[#allocation24_spill]] %s2335_s5  ;;  %s2302_s10 = sshll.u32 %s1744_s29, 7 }
  0x28   : > { %p1917_p4 = por %p194_p0, %p193_p13  ;;  %s235_s16 = sand.u32 1, %s1752_s6  }
  0x29   : > { %s237_s15 = sand.u32 1, %s1720_s23   ;;  %s1170_s11 = sshll.u32 %s1748_s30, 1 }
  0x2a   : > { %s2337_s27 = scalar_select %p1917_p4, 1, 0 }
  0x2b   : > { %s1923_s17 = sshll.u32 %s237_s15, 8  ;;  %s246_s9 = sadd.s32 %s2302_s10, %s1170_s11 }
  0x2c   : > { %2338 = sst [smem:[#allocation25_spill]] %s2337_s27  ;;  %s239_s21 = scalar_lea.vmem [#allocation7], %s1923_s17 }
  0x2d   : > { %s249_s20 = sshll.u32 %s239_s21, 4  ;;  %s1172_s5 = sshll.u32 %s246_s9, 6  ;;  %s1929_s20 = int_to_ptr.vmem [resolvable:$true] %s249_s20 }
  0x2e   : > { %s2339_s1 = sld [smem:[#allocation26_spill]]  ;;  %p1940_p6 = pnand %p2306_p3, %p1883_p5 }
  0x2f   : > { %s1948_s11 = scalar_lea.hbm %s2292_s3, %s1172_s5  ;;  %s1950_s18 = scalar_lea.sflag [#allocation8], %s235_s16 }
  0x30   : > { %p2317_p10 = pneg %p1940_p6 }
  0x34   : > { %s1934_s4 = scalar_lea.hbm %s2339_s1, %s1172_s5  ;;  %s1517_s30 = scalar_lea.hbm %s2339_s1, 16384 }
  0x35   : > { %s1512_s13 = scalar_lea.hbm %s1934_s4, 4096  ;;  %p1518_p13 = scmp.lt.u32.totalorder %s1934_s4, %s2339_s1 }
  0x36   : > { %p1513_p9 = scmp.ne.s32.totalorder %s1934_s4, %s1512_s13  ;;  %p1519_p0 = scmp.lt.u32.totalorder %s1517_s30, %s1512_s13 }
  0x37   : > { %p1521_p2 = scmp.lt.u32.totalorder %s1512_s13, %s1934_s4 }
  0x38   : > { %p1515_p5 = pnand %p2317_p10, %p1513_p9  ;;  %p1520_p3 = por %p1519_p0, %p1518_p13 }
  0x3a   : > { %p1516_p11 = pneg %p1515_p5  ;;  %p1522_p1 = por %p1521_p2, %p1520_p3 }
  0x3c   : > { %p1523_p8 = pnand %p1522_p1, %p1516_p11 }
  0x3e   : > { %1526 = shalt.err (!%p1523_p8)
}
  0x3f   : > { %s1527_s5 = scalar_lea.vmem %s1929_s20, 4096  ;;  %s1754_s10 = smov [#allocation7]  }
  0x40   : > { %p1528_p9 = scmp.ne.s32.totalorder %s1929_s20, %s1527_s5  ;;  %s1532_s16 = sshll.u32 %s1754_s10, 4  ;;  %s1533_s16 = int_to_ptr.vmem [resolvable:$false] %s1532_s16 }
  0x41   : > { %s1534_s23 = scalar_lea.vmem %s1533_s16, 8192  ;;  %p1535_p12 = scmp.lt.s32.totalorder %s1929_s20, %s1533_s16 }
  0x42   : > { %p1530_p5 = pnand %p1528_p9, %p2317_p10  ;;  %p1536_p13 = scmp.lt.s32.totalorder %s1534_s23, %s1527_s5 }
  0x44   : > { %p1531_p4 = pneg %p1530_p5  ;;  %p1537_p0 = por %p1536_p13, %p1535_p12 }
  0x46   : > { %p1538_p2 = pnand %p1537_p0, %p1531_p4 }
  0x48   : > { %1541 = shalt.err (!%p1538_p2)
}
  0x49   : > { %s2310_s27 = smov 256   ;;  %s2312_s30 = smov 128  }
  0x4a   : > { %s2314_s9 = smov 8   ;;  %s271_s21 = scalar_lea.vmem [#allocation9], %s1923_s17 }
  0x4b   : > { %1276 = dma.hbm_to_vmem [thread:$0]  (!%p1940_p6), %s1934_s4, 4096, %s1929_s20, %s1950_s18, %s2310_s27, %s2312_s30, %s2314_s9  }
  0x4c   : > { %s281_s13 = sshll.u32 %s271_s21, 4  ;;  %p1178_p1 = scmp.ge.s32.totalorder %s1752_s6, 1  ;;  %s2000_s13 = int_to_ptr.vmem [resolvable:$true] %s281_s13 }
  0x4d   : > { %p297_p12 = scmp.lt.s32.totalorder %s1752_s6, 5  ;;  %s43_s5 = sadd.s32 1, %s1732_s26 }
  0x4e   : > { %p50_p4 = scmp.ne.s32.totalorder %s1732_s26, %s1728_s25  ;;  %p2342_p8 = scmp.eq.s32.totalorder %s1879_s12, 0 }
  0x4f   : > { %p1984_p3 = pnand %p1178_p1, %p297_p12  ;;  %p2343_p11 = scmp.eq.s32.totalorder %s1752_s6, 0 }
  0x50   : > { %s1994_s10 = scalar_select %p2342_p8, %s1732_s26, %s43_s5  }
  0x51   : > { %s2341_s8 = scalar_select %p1984_p3, 1, 0 }
  0x52   : > { %p52_p9 = por %p2343_p11, %p50_p4  ;;  %p56_p5 = scmp.ne.s32.totalorder %s1728_s25, %s1724_s24 }
  0x53   : > { %s214_s4 = sand.u32 1, %s1732_s26   ;;  %p2344_p13 = scmp.eq.s32.totalorder %s1864_s7, 0 }
  0x54   : > { %s2346_s17 = sshll.u32 %s1744_s29, 7  ;;  %s1165_s12 = sshll.u32 %s214_s4, 4 }
  0x55   : > { %p2005_p0 = por %p2344_p13, %p56_p5  ;;  %s2014_s21 = scalar_lea.hbm %s2289_s0, %s2346_s17 }
  0x56   : > { %p2347_p2 = scmp.lt.s32.totalorder %s1752_s6, 4  ;;  %s218_s5 = scalar_lea.vmem [#allocation4], %s1165_s12 }
  0x57   : > { %s2345_s20 = scalar_select %p2005_p0, 1, 0 }
  0x58   : > { %p2018_p1 = pnand %p2347_p2, %p52_p9  ;;  %s225_s27 = sshll.u32 %s218_s5, 4  ;;  %s2022_s27 = int_to_ptr.vmem [resolvable:$true] %s225_s27 }
  0x59   : > { %s2024_s30 = scalar_lea.sflag [#allocation5], %s214_s4  ;;  %s1542_s17 = scalar_lea.hbm %s2014_s21, 256 }
  0x5a   : > { %p1543_p12 = scmp.ne.s32.totalorder %s2014_s21, %s1542_s17  ;;  %p1544_p4 = pneg %p2018_p1 }
  0x5b   : > { %s1547_s9 = scalar_lea.hbm %s2289_s0, 512  ;;  %p1548_p9 = scmp.lt.u32.totalorder %s2014_s21, %s2289_s0 }
  0x5c   : > { %p1545_p8 = pnand %p1544_p4, %p1543_p12  ;;  %p1549_p5 = scmp.lt.u32.totalorder %s1547_s9, %s1542_s17 }
  0x5d   : > { %p1551_p2 = scmp.lt.u32.totalorder %s1542_s17, %s2014_s21 }
  0x5e   : > { %p1546_p11 = pneg %p1545_p8  ;;  %p1550_p13 = por %p1549_p5, %p1548_p9 }
  0x60   : > { %p1552_p10 = por %p1551_p2, %p1550_p13 }
  0x62   : > { %p1553_p7 = pnand %p1552_p10, %p1546_p11 }
  0x64   : > { %1556 = shalt.err (!%p1553_p7)
}
  0x65   : > { %s1557_s4 = scalar_lea.vmem %s2022_s27, 256  ;;  %s1758_s12 = smov [#allocation4]  }
  0x66   : > { %p1558_p12 = scmp.ne.s32.totalorder %s2022_s27, %s1557_s4  ;;  %s1562_s5 = sshll.u32 %s1758_s12, 4  ;;  %s1563_s5 = int_to_ptr.vmem [resolvable:$false] %s1562_s5 }
  0x67   : > { %s1564_s1 = scalar_lea.vmem %s1563_s5, 512  ;;  %p1565_p3 = scmp.lt.s32.totalorder %s2022_s27, %s1563_s5 }
  0x68   : > { %p1560_p8 = pnand %p1558_p12, %p1544_p4  ;;  %p1566_p9 = scmp.lt.s32.totalorder %s1564_s1, %s1557_s4 }
  0x6a   : > { %p1561_p0 = pneg %p1560_p8  ;;  %p1567_p5 = por %p1566_p9, %p1565_p3 }
  0x6c   : > { %p1568_p13 = pnand %p1567_p5, %p1561_p0 }
  0x6e   : > { %1571 = shalt.err (!%p1568_p13)
}
  0x6f   : > { %s2349_s29 = smov 8   ;;  %s2350_s9 = smov 128  }
  0x70   : > { %s2351_s17 = smov 256   ;;  %s1572_s16 = scalar_lea.hbm %s1948_s11, 4096 }
  0x71   : > { %1273 = dma.hbm_to_vmem [thread:$0]  (!%p2018_p1), %s2014_s21, 256, %s2022_s27, %s2024_s30, %s2351_s17, %s2350_s9, %s2349_s29  }
  0x72   : > { %p1573_p7 = scmp.ne.s32.totalorder %s1948_s11, %s1572_s16  ;;  %p2352_p10 = pneg %p1940_p6 }
  0x73   : > { %s1577_s4 = scalar_lea.hbm %s2292_s3, 16384  ;;  %p1578_p4 = scmp.lt.u32.totalorder %s1948_s11, %s2292_s3 }
  0x74   : > { %p1575_p3 = pnand %p1573_p7, %p2352_p10  ;;  %p1579_p11 = scmp.lt.u32.totalorder %s1577_s4, %s1572_s16 }
  0x75   : > { %p1581_p12 = scmp.lt.u32.totalorder %s1572_s16, %s1948_s11 }
  0x76   : > { %p1576_p0 = pneg %p1575_p3  ;;  %p1580_p2 = por %p1579_p11, %p1578_p4 }
  0x78   : > { %p1582_p8 = por %p1581_p12, %p1580_p2 }
  0x7a   : > { %p1583_p9 = pnand %p1582_p8, %p1576_p0 }
  0x7c   : > { %1586 = shalt.err (!%p1583_p9)
}
  0x7d   : > { %s1587_s27 = scalar_lea.vmem %s2000_s13, 4096  ;;  %p2353_p5 = pmov %p2352_p10 }
  0x7e   : > { %p1588_p1 = scmp.ne.s32.totalorder %s2000_s13, %s1587_s27  ;;  %s1759_s30 = smov [#allocation9]  }
  0x7f   : > { %s1592_s21 = sshll.u32 %s1759_s30, 4  ;;  %s1593_s21 = int_to_ptr.vmem [resolvable:$false] %s1592_s21 }
  0x80   : > { %p1590_p13 = pnand %p1588_p1, %p2353_p5  ;;  %s1594_s1 = scalar_lea.vmem %s1593_s21, 8192 }
  0x81   : > { %p1595_p10 = scmp.lt.s32.totalorder %s2000_s13, %s1593_s21  ;;  %p1596_p3 = scmp.lt.s32.totalorder %s1594_s1, %s1587_s27 }
  0x82   : > { %p1591_p7 = pneg %p1590_p13 }
  0x83   : > { %p1597_p4 = por %p1596_p3, %p1595_p10 }
  0x85   : > { %p1598_p11 = pnand %p1597_p4, %p1591_p7 }
  0x87   : > { %1601 = shalt.err (!%p1598_p11)
}
  0x88   : > { %1279 = dma.hbm_to_vmem [thread:$0]  (!%p1940_p6), %s1948_s11, 4096, %s2000_s13, %s1950_s18, %s2351_s17, %s2350_s9, %s2349_s29  }
  0x89   : > { %p2354_p0 = scmp.ne.s32.totalorder %s2341_s8, 0 }
  0x8a   : > { %s303_s16 = sand.u32 (!%p2354_p0), 1, %s1728_s25   ;;  %p2355_p2 = scmp.ne.s32.totalorder (!%p2354_p0), %s2345_s20, 0 }
  0x8b   : > { %301 = sbr.rel (%p2354_p0) target bundleno = 524 (0x20c), region = 40  ;;  %s2085_s23 = sshll.u32 (!%p2354_p0), %s303_s16, 4 }
  0x8c   : > { %s304_s24 = scalar_lea.sflag (!%p2354_p0), [#allocation5], %s303_s16  ;;  %s307_s4 = scalar_lea.vmem (!%p2354_p0), [#allocation4], %s2085_s23 }
  0x92   : > { %1687 = dma.done.wait (%p2355_p2), %s304_s24, 256  }
  0x93   : > { %1689 = vsyncadd (%p2355_p2), %s304_s24, 4294967040  ;;  %s312_s15 = sand.u32 1, %s1864_s7   ;;  %s314_s11 = sand.u32 1, %s1716_s22  }
  0x94   : > { %s1180_s18 = sshll.u32 %s314_s11, 8  ;;  %s313_s13 = scalar_lea.sflag [#allocation8], %s312_s15 }
  0x95   : > { %s2094_s8 = scalar_lea.vmem [#allocation7], %s1180_s18  ;;  %p2356_p6 = scmp.ne.s32.totalorder %s2332_s14, 0 }
  0x97   : > { %1691 = dma.done.wait (%p2356_p6), %s313_s13, 8192  }
  0x98   : > { %1693 = vsyncadd (%p2356_p6), %s313_s13, 4294959104  ;;  %s367_s29 = sand.u32 1, %s1704_s19   ;;  %s1183_s9 = sshll.u32 %s1740_s28, 1 }
  0x99   : > { %s1182_s20 = sshll.u32 %s367_s29, 5  ;;  %p374_p12 = scmp.lt.s32.totalorder %s1183_s9, 3 }
  0x9a   : > { %s2357_s14 = sld [smem:[#allocation27_spill]]  ;;  %s2114_s21 = scalar_lea.vmem [#allocation9], %s1180_s18 }
  0x9b   : > { %s2392_s9 = smov (!%p374_p12, %s1183_s9), 3  ;;  %s2116_s1 = scalar_lea.vmem [#allocation10], %s1182_s20 }
  0x9c   : > { %s376_s12 = scalar_lea.vmem %s2291_s2, %s2392_s9  ;;  %s2358_s16 = sld [smem:[#allocation17_spill]] }
  0xa0   : > { %s383_s30 = scalar_lea.vmem %s2357_s14, %s2392_s9 }
  0xa2   : > { %p1185_p8 = scmp.ne.s32.totalorder %s2358_s16, 0 }
  0xa3   : > { %v1760_v0 = vmov (!%p1185_p8), 0.0  }
  0xa4   : > { %389 = sbr.rel (%p1185_p8) target bundleno = 171 (0xab), region = 56  ;;  %390 = vst [vmem:[#allocation2] sm:$0xff] (!%p1185_p8), %v1760_v0  ;;  %391 = vst [vmem:[#allocation2 + $0x8] sm:$0xff] (!%p1185_p8), %v1760_v0 }
  0xa5   : > { %392 = vst [vmem:[#allocation2 + $0x10] sm:$0xff] (!%p1185_p8), %v1760_v0  ;;  %393 = vst [vmem:[#allocation2 + $0x18] sm:$0xff] (!%p1185_p8), %v1760_v0 }
  0xa6   : > { %394 = vst [vmem:[#allocation3] sm:$0xff] (!%p1185_p8), %v1760_v0  ;;  %395 = vst [vmem:[#allocation3 + $0x8] sm:$0xff] (!%p1185_p8), %v1760_v0 }
  0xa7   : > { %396 = vst [vmem:[#allocation3 + $0x10] sm:$0xff] (!%p1185_p8), %v1760_v0  ;;  %397 = vst [vmem:[#allocation3 + $0x18] sm:$0xff] (!%p1185_p8), %v1760_v0 }
  0xab PF: > { %v1405_v1 = vld [vmem:[%s2094_s8 + $0x4] ss:$8 sps:$4 sm:$0xff]   ;;  %v1409_v3 = vld [vmem:[%s2094_s8] ss:$8 sps:$4 sm:$0xff]   ;;  %v1411_v5 = vld [vmem:[%s2094_s8 + $0x14] ss:$8 sps:$4 sm:$0xff]  }
  0xac   : > { %v1407_v2 = vld [vmem:[%s2114_s21 + $0x4] ss:$8 sps:$4 sm:$0xff]   ;;  %606 = vmatprep.subr.bf16.mxu0 %v1405_v1  ;;  %v1410_v4 = vld [vmem:[%s2114_s21] ss:$8 sps:$4 sm:$0xff]   ;;  %v1413_v6 = vld [vmem:[%s2114_s21 + $0x14] ss:$8 sps:$4 sm:$0xff]  }
  0xad   : > { %853 = vmatprep.subr.bf16.mxu1 %v1407_v2  ;;  %607 = vmatpush1.bf16.msra.mxu0 %v1409_v3  ;;  %v1415_v7 = vld [vmem:[%s2094_s8 + $0x10] ss:$8 sps:$4 sm:$0xff]   ;;  %v1417_v9 = vld [vmem:[%s2094_s8 + $0x24] ss:$8 sps:$4 sm:$0xff]   ;;  %v1421_v11 = vld [vmem:[%s2094_s8 + $0x20] ss:$8 sps:$4 sm:$0xff]  }
  0xae   : > { %854 = vmatpush1.bf16.msra.mxu1 %v1410_v4  ;;  %608 = vmatprep.subr.bf16.mxu0 %v1411_v5  ;;  %v1416_v8 = vld [vmem:[%s2114_s21 + $0x10] ss:$8 sps:$4 sm:$0xff]   ;;  %v1419_v10 = vld [vmem:[%s2114_s21 + $0x24] ss:$8 sps:$4 sm:$0xff]   ;;  %v1422_v12 = vld [vmem:[%s2114_s21 + $0x20] ss:$8 sps:$4 sm:$0xff]  }
  0xaf   : > { %855 = vmatprep.subr.bf16.mxu1 %v1413_v6  ;;  %v1423_v13 = vld [vmem:[%s2094_s8 + $0x34] ss:$8 sps:$4 sm:$0xff]   ;;  %v1427_v15 = vld [vmem:[%s2094_s8 + $0x30] ss:$8 sps:$4 sm:$0xff]   ;;  %v1429_v17 = vld [vmem:[%s2094_s8 + $0x44] ss:$8 sps:$4 sm:$0xff]  }
  0xb0   : > { %v1425_v14 = vld [vmem:[%s2114_s21 + $0x34] ss:$8 sps:$4 sm:$0xff]   ;;  %v1428_v16 = vld [vmem:[%s2114_s21 + $0x30] ss:$8 sps:$4 sm:$0xff]   ;;  %v1431_v18 = vld [vmem:[%s2114_s21 + $0x44] ss:$8 sps:$4 sm:$0xff]  }
  0xb1   : > { %609 = vmatpush1.bf16.msra.mxu0 %v1415_v7  ;;  %v1433_v19 = vld [vmem:[%s2094_s8 + $0x40] ss:$8 sps:$4 sm:$0xff]   ;;  %v1435_v21 = vld [vmem:[%s2094_s8 + $0x54] ss:$8 sps:$4 sm:$0xff]   ;;  %v1439_v23 = vld [vmem:[%s2094_s8 + $0x50] ss:$8 sps:$4 sm:$0xff]  }
  0xb2   : > { %856 = vmatpush1.bf16.msra.mxu1 %v1416_v8  ;;  %610 = vmatprep.subr.bf16.mxu0 %v1417_v9  ;;  %v1434_v20 = vld [vmem:[%s2114_s21 + $0x40] ss:$8 sps:$4 sm:$0xff]   ;;  %v1437_v22 = vld [vmem:[%s2114_s21 + $0x54] ss:$8 sps:$4 sm:$0xff]   ;;  %v1440_v24 = vld [vmem:[%s2114_s21 + $0x50] ss:$8 sps:$4 sm:$0xff]  }
  0xb3   : > { %857 = vmatprep.subr.bf16.mxu1 %v1419_v10  ;;  %v1441_v25 = vld [vmem:[%s2094_s8 + $0x64] ss:$8 sps:$4 sm:$0xff]   ;;  %v1445_v27 = vld [vmem:[%s2094_s8 + $0x60] ss:$8 sps:$4 sm:$0xff]   ;;  %v1447_v29 = vld [vmem:[%s2094_s8 + $0x74] ss:$8 sps:$4 sm:$0xff]  }
  0xb4   : > { %v1443_v26 = vld [vmem:[%s2114_s21 + $0x64] ss:$8 sps:$4 sm:$0xff]   ;;  %v1446_v28 = vld [vmem:[%s2114_s21 + $0x60] ss:$8 sps:$4 sm:$0xff]   ;;  %v1449_v30 = vld [vmem:[%s2114_s21 + $0x74] ss:$8 sps:$4 sm:$0xff]  }
  0xb5   : > { %611 = vmatpush1.bf16.msra.mxu0 %v1421_v11  ;;  %v1451_v31 = vld [vmem:[%s2094_s8 + $0x70] ss:$8 sps:$4 sm:$0xff]   ;;  %v1453_v33 = vld [vmem:[%s2094_s8 + $0x84] ss:$8 sps:$4 sm:$0xff]   ;;  %v1457_v35 = vld [vmem:[%s2094_s8 + $0x80] ss:$8 sps:$4 sm:$0xff]  }
  0xb6   : > { %858 = vmatpush1.bf16.msra.mxu1 %v1422_v12  ;;  %612 = vmatprep.subr.bf16.mxu0 %v1423_v13  ;;  %v1452_v32 = vld [vmem:[%s2114_s21 + $0x70] ss:$8 sps:$4 sm:$0xff]   ;;  %v1455_v34 = vld [vmem:[%s2114_s21 + $0x84] ss:$8 sps:$4 sm:$0xff]   ;;  %v1458_v36 = vld [vmem:[%s2114_s21 + $0x80] ss:$8 sps:$4 sm:$0xff]  }
  0xb7   : > { %859 = vmatprep.subr.bf16.mxu1 %v1425_v14  ;;  %v1459_v37 = vld [vmem:[%s2094_s8 + $0x94] ss:$8 sps:$4 sm:$0xff]   ;;  %v1463_v39 = vld [vmem:[%s2094_s8 + $0x90] ss:$8 sps:$4 sm:$0xff]   ;;  %v1465_v41 = vld [vmem:[%s2094_s8 + $0xa4] ss:$8 sps:$4 sm:$0xff]  }
  0xb8   : > { %v1461_v38 = vld [vmem:[%s2114_s21 + $0x94] ss:$8 sps:$4 sm:$0xff]   ;;  %v1464_v40 = vld [vmem:[%s2114_s21 + $0x90] ss:$8 sps:$4 sm:$0xff]   ;;  %v1467_v42 = vld [vmem:[%s2114_s21 + $0xa4] ss:$8 sps:$4 sm:$0xff]  }
  0xb9   : > { %613 = vmatpush1.bf16.msra.mxu0 %v1427_v15  ;;  %v1469_v43 = vld [vmem:[%s2094_s8 + $0xa0] ss:$8 sps:$4 sm:$0xff]   ;;  %v1471_v45 = vld [vmem:[%s2094_s8 + $0xb4] ss:$8 sps:$4 sm:$0xff]   ;;  %v1475_v48 = vld [vmem:[%s2094_s8 + $0xb0] ss:$8 sps:$4 sm:$0xff]  }
  0xba   : > { %860 = vmatpush1.bf16.msra.mxu1 %v1428_v16  ;;  %614 = vmatprep.subr.bf16.mxu0 %v1429_v17  ;;  %v1470_v44 = vld [vmem:[%s2114_s21 + $0xa0] ss:$8 sps:$4 sm:$0xff]   ;;  %v1473_v46 = vld [vmem:[%s2114_s21 + $0xb4] ss:$8 sps:$4 sm:$0xff]   ;;  %v1476_v49 = vld [vmem:[%s2114_s21 + $0xb0] ss:$8 sps:$4 sm:$0xff]  }
  0xbb   : > { %861 = vmatprep.subr.bf16.mxu1 %v1431_v18  ;;  %v1503_v47 = vld [vmem:[%s307_s4 + $0x4] ss:$8 sps:$4 sm:$0xff]   ;;  %v1481_v52 = vld [vmem:[%s2094_s8 + $0xc0] ss:$8 sps:$4 sm:$0xff]   ;;  %v1487_v56 = vld [vmem:[%s2094_s8 + $0xd0] ss:$8 sps:$4 sm:$0xff]  }
  0xbc   : > { %v1477_v50 = vld [vmem:[%s2094_s8 + $0xc4] ss:$8 sps:$4 sm:$0xff]   ;;  %638 = vmatprep.mubr.bf16.mxu0 %v1503_v47  ;;  %885 = vmatprep.mubr.bf16.mxu1 %v1503_v47  ;;  %v1482_v53 = vld [vmem:[%s2114_s21 + $0xc0] ss:$8 sps:$4 sm:$0xff]   ;;  %v1483_v54 = vld [vmem:[%s2094_s8 + $0xd4] ss:$8 sps:$4 sm:$0xff]  }
  0xbd   : > { %615 = vmatpush1.bf16.msra.mxu0 %v1433_v19  ;;  %v1479_v51 = vld [vmem:[%s2114_s21 + $0xc4] ss:$8 sps:$4 sm:$0xff]   ;;  %v1485_v55 = vld [vmem:[%s2114_s21 + $0xd4] ss:$8 sps:$4 sm:$0xff]   ;;  %v1488_v57 = vld [vmem:[%s2114_s21 + $0xd0] ss:$8 sps:$4 sm:$0xff]  }
  0xbe   : > { %862 = vmatpush1.bf16.msra.mxu1 %v1434_v20  ;;  %616 = vmatprep.subr.bf16.mxu0 %v1435_v21  ;;  %v1489_v58 = vld [vmem:[%s2094_s8 + $0xe4] ss:$8 sps:$4 sm:$0xff]   ;;  %v1493_v60 = vld [vmem:[%s2094_s8 + $0xe0] ss:$8 sps:$4 sm:$0xff]   ;;  %v1495_v62 = vld [vmem:[%s2094_s8 + $0xf4] ss:$8 sps:$4 sm:$0xff]  }
  0xbf   : > { %863 = vmatprep.subr.bf16.mxu1 %v1437_v22  ;;  %v1491_v59 = vld [vmem:[%s2114_s21 + $0xe4] ss:$8 sps:$4 sm:$0xff]   ;;  %v1494_v61 = vld [vmem:[%s2114_s21 + $0xe0] ss:$8 sps:$4 sm:$0xff]   ;;  %v1497_v63 = vld [vmem:[%s2114_s21 + $0xf4] ss:$8 sps:$4 sm:$0xff]  }
  0xc0   : > { %v1499_v0 = vld [vmem:[%s2094_s8 + $0xf0] ss:$8 sps:$4 sm:$0xff]   ;;  %v400_v3 = vld [vmem:[#allocation2] sm:$0xff]  ;;  %v401_v5 = vld [vmem:[#allocation2 + $0x8] sm:$0xff]  ;;  %s2359_s23 = sld [smem:[#allocation17_spill]] }
  0xc1   : > { %617 = vmatpush1.bf16.msra.mxu0 %v1439_v23  ;;  %v1500_v1 = vld [vmem:[%s2114_s21 + $0xf0] ss:$8 sps:$4 sm:$0xff]   ;;  %v657_v4 = vld [vmem:[#allocation3] sm:$0xff]  ;;  %v658_v6 = vld [vmem:[#allocation3 + $0x8] sm:$0xff] }
  0xc2   : > { %864 = vmatpush1.bf16.msra.mxu1 %v1440_v24  ;;  %618 = vmatprep.subr.bf16.mxu0 %v1441_v25  ;;  %v1501_v2 = vld [vmem:[%s307_s4] ss:$8 sps:$4 sm:$0xff]  }
  0xc3   : > { %865 = vmatprep.subr.bf16.mxu1 %v1443_v26  ;;  %v402_v9 = vld [vmem:[#allocation2 + $0x10] sm:$0xff]  ;;  %v403_v15 = vld [vmem:[#allocation2 + $0x18] sm:$0xff] }
  0xc4   : > { %v659_v10 = vld [vmem:[#allocation3 + $0x10] sm:$0xff]  ;;  %v660_v16 = vld [vmem:[#allocation3 + $0x18] sm:$0xff] }
  0xc5   : > { %619 = vmatpush1.bf16.msra.mxu0 %v1445_v27 }
  0xc6   : > { %866 = vmatpush1.bf16.msra.mxu1 %v1446_v28  ;;  %620 = vmatprep.subr.bf16.mxu0 %v1447_v29  ;;  %p1252_p9 = scmp.ne.s32.totalorder %s2359_s23, 1 }
  0xc7   : > { %867 = vmatprep.subr.bf16.mxu1 %v1449_v30  ;;  %v914_v27 = vlaneseq (!%p1252_p9)  ;;  %v912_v29 = vld [vmem:[%s376_s12] sm:$0x3] (!%p1252_p9) }
  0xc9   : > { %621 = vmatpush1.bf16.msra.mxu0 %v1451_v31  ;;  %v915_v28 = vshrl.u32 (!%p1252_p9), %v914_v27, 7 }
  0xca   : > { %868 = vmatpush1.bf16.msra.mxu1 %v1452_v32  ;;  %622 = vmatprep.subr.bf16.mxu0 %v1453_v33 }
  0xcb   : > { %869 = vmatprep.subr.bf16.mxu1 %v1455_v34  ;;  %v916_v30 = vsub.s32 (!%p1252_p9), 0, %v915_v28  ;;  %v920_v31 = vsub.s32 (!%p1252_p9), 1, %v915_v28 }
  0xcd   : > { %623 = vmatpush1.bf16.msra.mxu0 %v1457_v35  ;;  %v917_v35 = vrot.slane (!%p1252_p9), %v912_v29, %v916_v30 }
  0xce   : > { %870 = vmatpush1.bf16.msra.mxu1 %v1458_v36  ;;  %624 = vmatprep.subr.bf16.mxu0 %v1459_v37  ;;  %v921_v37 = vrot.slane (!%p1252_p9), %v912_v29, %v920_v31 }
  0xcf   : > { %871 = vmatprep.subr.bf16.mxu1 %v1461_v38 }
  0xd1   : > { %625 = vmatpush1.bf16.msra.mxu0 %v1463_v39 }
  0xd2   : > { %872 = vmatpush1.bf16.msra.mxu1 %v1464_v40  ;;  %626 = vmatprep.subr.bf16.mxu0 %v1465_v41 }
  0xd3   : > { %873 = vmatprep.subr.bf16.mxu1 %v1467_v42 }
  0xd5   : > { %627 = vmatpush1.bf16.msra.mxu0 %v1469_v43 }
  0xd6   : > { %874 = vmatpush1.bf16.msra.mxu1 %v1470_v44  ;;  %628 = vmatprep.subr.bf16.mxu0 %v1471_v45 }
  0xd7   : > { %875 = vmatprep.subr.bf16.mxu1 %v1473_v46 }
  0xd9   : > { %629 = vmatpush1.bf16.msra.mxu0 %v1475_v48 }
  0xda   : > { %876 = vmatpush1.bf16.msra.mxu1 %v1476_v49  ;;  %630 = vmatprep.subr.bf16.mxu0 %v1477_v50 }
  0xdb   : > { %877 = vmatprep.subr.bf16.mxu1 %v1479_v51 }
  0xdd   : > { %631 = vmatpush1.bf16.msra.mxu0 %v1481_v52 }
  0xde   : > { %878 = vmatpush1.bf16.msra.mxu1 %v1482_v53  ;;  %632 = vmatprep.subr.bf16.mxu0 %v1483_v54 }
  0xdf   : > { %879 = vmatprep.subr.bf16.mxu1 %v1485_v55 }
  0xe1   : > { %633 = vmatpush1.bf16.msra.mxu0 %v1487_v56 }
  0xe2   : > { %880 = vmatpush1.bf16.msra.mxu1 %v1488_v57  ;;  %634 = vmatprep.subr.bf16.mxu0 %v1489_v58 }
  0xe3   : > { %881 = vmatprep.subr.bf16.mxu1 %v1491_v59 }
  0xe5   : > { %635 = vmatpush1.bf16.msra.mxu0 %v1493_v60 }
  0xe6   : > { %882 = vmatpush1.bf16.msra.mxu1 %v1494_v61  ;;  %636 = vmatprep.subr.bf16.mxu0 %v1495_v62  ;;  %v968_v62 = vld [vmem:[%s383_s30] sm:$0x3] (!%p1252_p9) }
  0xe7   : > { %883 = vmatprep.subr.bf16.mxu1 %v1497_v63 }
  0xe9   : > { %637 = vmatpush1.bf16.msra.mxu0 %v1499_v0 }
  0xea   : > { %884 = vmatpush1.bf16.msra.mxu1 %v1500_v1 }
  0xec   : > { %639 = vmatmul.mubr.bf16.vlgmr.msra.gmra.mrb[0].mxu0 %v1501_v2 }
  0xed   : > { %886 = vmatmul.mubr.bf16.vlgmr.msra.gmra.mrb[0].mxu1 %v1501_v2  ;;  %v973_v2 = vrot.slane (!%p1252_p9), %v968_v62, %v916_v30 }
 0x1bf   : > { %v640_v7 = vpop.f32.mrb[0].mxu0 }
 0x1c0   : > { %v887_v8 = vpop.f32.mrb[0].mxu1  ;;  %v649_v11 = vadd.f32 %v640_v7, %v400_v3  ;;  %v642_v13 = vpop.f32.mrb[1].mxu0  ;;  %907 = sbr.rel (%p1252_p9) target bundleno = 495 (0x1ef), region = 60 }
 0x1c1   : > { %v896_v12 = vadd.f32 %v887_v8, %v657_v4  ;;  %v889_v14 = vpop.f32.mrb[1].mxu1  ;;  %v650_v17 = vadd.f32 %v642_v13, %v401_v5  ;;  %v644_v19 = vpop.f32.mrb[2].mxu0 }
 0x1c2   : > { %v897_v18 = vadd.f32 %v889_v14, %v658_v6  ;;  %v891_v20 = vpop.f32.mrb[2].mxu1  ;;  %653 = vst [vmem:[#allocation2] sm:$0xff] %v649_v11  ;;  %v651_v21 = vadd.f32 %v644_v19, %v402_v9  ;;  %v646_v23 = vpop.f32.mrb[3].mxu0  ;;  %v977_v6 = vrot.slane (!%p1252_p9), %v968_v62, %v920_v31 }
 0x1c3   : > { %900 = vst [vmem:[#allocation3] sm:$0xff] %v896_v12  ;;  %v898_v22 = vadd.f32 %v891_v20, %v659_v10  ;;  %v893_v24 = vpop.f32.mrb[3].mxu1  ;;  %654 = vst [vmem:[#allocation2 + $0x8] sm:$0xff] %v650_v17  ;;  %v652_v25 = vadd.f32 %v646_v23, %v403_v15 }
 0x1c4   : > { %901 = vst [vmem:[#allocation3 + $0x8] sm:$0xff] %v897_v18  ;;  %v899_v26 = vadd.f32 %v893_v24, %v660_v16  ;;  %655 = vst [vmem:[#allocation2 + $0x10] sm:$0xff] %v651_v21 }
 0x1c5   : > { %902 = vst [vmem:[#allocation3 + $0x10] sm:$0xff] %v898_v22  ;;  %656 = vst [vmem:[#allocation2 + $0x18] sm:$0xff] %v652_v25 }
 0x1c6   : > { %903 = vst [vmem:[#allocation3 + $0x18] sm:$0xff] %v899_v26 }
 0x1c9   : > { %v908_v32 = vld [vmem:[#allocation2] sm:$0xff] }
 0x1ca   : > { %v909_v34 = vld [vmem:[#allocation2 + $0x8] sm:$0xff]  ;;  %v924_v38 = vadd.f32 %v917_v35, %v908_v32  ;;  %v964_v4 = vld [vmem:[#allocation3] sm:$0xff] }
 0x1cb   : > { %v910_v33 = vld [vmem:[#allocation2 + $0x10] sm:$0xff]  ;;  %v925_v40 = vadd.f32 %v921_v37, %v909_v34  ;;  %v965_v9 = vld [vmem:[#allocation3 + $0x8] sm:$0xff]  ;;  %v980_v15 = vadd.f32 %v973_v2, %v964_v4 }
 0x1cc   : > { %v911_v36 = vld [vmem:[#allocation2 + $0x18] sm:$0xff]  ;;  %v926_v39 = vadd.f32 %v917_v35, %v910_v33  ;;  %v928_v42 = vmul.f32 %v924_v38, %v924_v38  ;;  %v966_v12 = vld [vmem:[#allocation3 + $0x10] sm:$0xff]  ;;  %v981_v19 = vadd.f32 %v977_v6, %v965_v9 }
 0x1cd   : > { %v927_v41 = vadd.f32 %v921_v37, %v911_v36  ;;  %v929_v43 = vmul.f32 %v925_v40, %v925_v40  ;;  %v967_v17 = vld [vmem:[#allocation3 + $0x18] sm:$0xff]  ;;  %v982_v23 = vadd.f32 %v973_v2, %v966_v12 }
 0x1ce   : > { %v930_v44 = vmul.f32 %v926_v39, %v926_v39  ;;  %v932_v46 = vmul.f32 %v928_v42, %v924_v38  ;;  %v983_v26 = vadd.f32 %v977_v6, %v967_v17 }
 0x1cf   : > { %v931_v45 = vmul.f32 %v927_v41, %v927_v41  ;;  %v933_v47 = vmul.f32 %v929_v43, %v925_v40 }
 0x1d0   : > { %v934_v48 = vmul.f32 %v930_v44, %v926_v39  ;;  %v936_v50 = vmul.f32 0.044715, %v932_v46 }
 0x1d1   : > { %v935_v49 = vmul.f32 %v931_v45, %v927_v41  ;;  %v937_v51 = vmul.f32 0.044715, %v933_v47 }
 0x1d2   : > { %v938_v52 = vmul.f32 0.044715, %v934_v48  ;;  %v940_v54 = vadd.f32 %v936_v50, %v924_v38 }
 0x1d3   : > { %v939_v53 = vmul.f32 0.044715, %v935_v49  ;;  %v941_v55 = vadd.f32 %v937_v51, %v925_v40 }
 0x1d4   : > { %v942_v56 = vadd.f32 %v938_v52, %v926_v39  ;;  %v944_v58 = vmul.f32 0.7978846, %v940_v54 }
 0x1d5   : > { %v943_v57 = vadd.f32 %v939_v53, %v927_v41  ;;  %v945_v59 = vmul.f32 0.7978846, %v941_v55 }
 0x1d6   : > { %v946_v60 = vmul.f32 0.7978846, %v942_v56  ;;  %1504 = vtanh.f32 %v944_v58 }
 0x1d7   : > { %v947_v61 = vmul.f32 0.7978846, %v943_v57  ;;  %1506 = vtanh.f32 %v945_v59 }
 0x1d8   : > { %1508 = vtanh.f32 %v946_v60 }
 0x1d9   : > { %1510 = vtanh.f32 %v947_v61 }
 0x1e0   : > { %v1505_v63 = vpop.eup %1504 }
 0x1e1   : > { %v1507_v0 = vpop.eup %1506  ;;  %v952_v1 = vadd.f32 1.0, %v1505_v63 }
 0x1e2   : > { %v1509_v3 = vpop.eup %1508  ;;  %v953_v5 = vadd.f32 1.0, %v1507_v0 }
 0x1e3   : > { %v1511_v7 = vpop.eup %1510  ;;  %v956_v8 = vmul.f32 0.5, %v952_v1  ;;  %v954_v10 = vadd.f32 1.0, %v1509_v3 }
 0x1e4   : > { %v957_v11 = vmul.f32 0.5, %v953_v5  ;;  %v955_v13 = vadd.f32 1.0, %v1511_v7 }
 0x1e5   : > { %v960_v14 = vmul.f32 %v956_v8, %v924_v38  ;;  %v958_v16 = vmul.f32 0.5, %v954_v10 }
 0x1e6   : > { %v961_v18 = vmul.f32 %v957_v11, %v925_v40  ;;  %v959_v20 = vmul.f32 0.5, %v955_v13 }
 0x1e7   : > { %v984_v21 = vmul.f32 0.1, %v960_v14  ;;  %v962_v22 = vmul.f32 %v958_v16, %v926_v39 }
 0x1e8   : > { %v985_v24 = vmul.f32 0.1, %v961_v18  ;;  %v963_v25 = vmul.f32 %v959_v20, %v927_v41 }
 0x1e9   : > { %v988_v27 = vadd.f32 %v984_v21, %v980_v15  ;;  %v986_v28 = vmul.f32 0.1, %v962_v22 }
 0x1ea   : > { %v989_v29 = vadd.f32 %v985_v24, %v981_v19  ;;  %v987_v30 = vmul.f32 0.1, %v963_v25 }
 0x1eb   : > { %992 = vst [vmem:[%s2116_s1] sm:$0xff] %v988_v27  ;;  %v990_v31 = vadd.f32 %v986_v28, %v982_v23 }
 0x1ec   : > { %993 = vst [vmem:[%s2116_s1 + $0x8] sm:$0xff] %v989_v29  ;;  %v991_v32 = vadd.f32 %v987_v30, %v983_v26 }
 0x1ed   : > { %994 = vst [vmem:[%s2116_s1 + $0x10] sm:$0xff] %v990_v31 }
 0x1ee   : > { %995 = vst [vmem:[%s2116_s1 + $0x18] sm:$0xff] %v991_v32 }
 0x1ef PF: > { %s2361_s13 = sld [smem:[#allocation24_spill]]  ;;  %s1261_s8 = sshll.u32 %s1740_s28, 8 }
 0x1f0   : > { %s2362_s7 = sld [smem:[#allocation28_spill]]  ;;  %s1010_s12 = sshll.u32 %s2116_s1, 4  ;;  %s2209_s12 = int_to_ptr.vmem [resolvable:$true] %s1010_s12 }
 0x1f1   : > { %s2213_s5 = scalar_lea.sflag [#allocation6], %s367_s29  ;;  %s1602_s27 = scalar_lea.vmem %s2209_s12, 512 }
 0x1f2   : > { %p1603_p1 = scmp.ne.s32.totalorder %s2209_s12, %s1602_s27  ;;  %s1761_s28 = smov [#allocation10]  }
 0x1f3   : > { %s1606_s14 = sshll.u32 %s1761_s28, 4  ;;  %s1607_s14 = int_to_ptr.vmem [resolvable:$false] %s1606_s14 }
 0x1f4   : > { %s1608_s30 = scalar_lea.vmem %s1607_s14, 1024  ;;  %p1609_p10 = scmp.lt.s32.totalorder %s2209_s12, %s1607_s14 }
 0x1f5   : > { %p2363_p5 = scmp.ne.s32.totalorder %s2361_s13, 0  ;;  %p1610_p3 = scmp.lt.s32.totalorder %s1608_s30, %s1602_s27 }
 0x1f6   : > { %s2206_s17 = scalar_lea.hbm %s2362_s7, %s1261_s8 }
 0x1f7   : > { %p1604_p13 = pnand %p1603_p1, %p2363_p5  ;;  %p1611_p4 = por %p1610_p3, %p1609_p10 }
 0x1f9   : > { %p1605_p7 = pneg %p1604_p13 }
 0x1fb   : > { %p1612_p11 = pnand %p1611_p4, %p1605_p7 }
 0x1fd   : > { %1615 = shalt.err (!%p1612_p11)
}
 0x1fe   : > { %s1616_s29 = scalar_lea.hbm %s2206_s17, 512  ;;  %s1620_s16 = scalar_lea.hbm %s2362_s7, 1024 }
 0x1ff   : > { %p1617_p0 = scmp.ne.s32.totalorder %s2206_s17, %s1616_s29  ;;  %p1621_p12 = scmp.lt.u32.totalorder %s2206_s17, %s2362_s7 }
 0x200   : > { %p1622_p8 = scmp.lt.u32.totalorder %s1620_s16, %s1616_s29  ;;  %p1624_p1 = scmp.lt.u32.totalorder %s1616_s29, %s2206_s17 }
 0x201   : > { %p1618_p2 = pnand %p1617_p0, %p2363_p5 }
 0x202   : > { %p1623_p9 = por %p1622_p8, %p1621_p12 }
 0x203   : > { %p1619_p6 = pneg %p1618_p2 }
 0x204   : > { %p1625_p13 = por %p1624_p1, %p1623_p9 }
 0x206   : > { %p1626_p7 = pnand %p1625_p13, %p1619_p6 }
 0x208   : > { %1629 = shalt.err (!%p1626_p7)
}
 0x209   : > { %s1762_s4 = smov 256   ;;  %s1763_s15 = smov 512  }
 0x20a   : > { %s1764_s11 = smov 16  }
 0x20b   : > { %1268 = dma.vmem_to_hbm [thread:$0]  (%p2363_p5), %s2209_s12, 512, %s2206_s17, %s2213_s5, %s1762_s4, %s1763_s15, %s1764_s11  }
 0x20c PF: > { %s2364_s18 = sld [smem:[#allocation14_spill]]  ;;  %s2365_s8 = sld [smem:[#allocation25_spill]] }
 0x20d   : > { %p1285_p10 = scmp.ge.s32.totalorder %s1752_s6, 2 }
 0x212   : > { %s1025_s20 = sand.u32 1, %s2364_s18   ;;  %p2366_p3 = scmp.ne.s32.totalorder %s2365_s8, 0 }
 0x213   : > { %s1026_s9 = scalar_lea.sflag [#allocation6], %s1025_s20 }
 0x214   : > { %p1281_p4 = pnand %p1285_p10, %p2366_p3 }
 0x216   : > { %1695 = dma.done.wait (!%p1281_p4), %s1026_s9, 512  }
 0x217   : > { %1697 = vsyncadd (!%p1281_p4), %s1026_s9, 4294966784  ;;  %s24_s6 = sadd.s32 1, %s1752_s6   ;;  %s2368_s13 = sld [smem:[#allocation15_spill]] }
 0x218   : > { %p2242_p11 = scmp.ge.s32.totalorder %s24_s6, 6   ;;  %s2369_s20 = sld [smem:[#allocation22_spill]] }
 0x219   : > { %s2370_s17 = sld [smem:[#allocation16_spill]]  ;;  %s2371_s23 = sld [smem:[#allocation23_spill]] }
 0x21a   : > { %s2372_s12 = sld [smem:[#allocation18_spill]]  ;;  %s2373_s28 = sld [smem:[#allocation19_spill]] }
 0x21b   : > { %s2374_s29 = sld [smem:[#allocation20_spill]]  ;;  %s2375_s30 = sld [smem:[#allocation21_spill]] }
 0x21c   : > { %s2377_s18 = smov %s1704_s19  ;;  %s2379_s21 = smov %s1716_s22 }
 0x21d   : > { %s2378_s19 = smov %s2368_s13  ;;  %s2381_s24 = smov %s1728_s25 }
 0x21e   : > { %s2382_s25 = smov %s1732_s26  ;;  %s2383_s26 = smov %s1994_s10 }
 0x21f   : > { %s2380_s22 = smov %s2370_s17  ;;  %23 = sbr.rel (!%p2242_p11) target bundleno = 16 (0x10), region = 123 }
 0x220   : > { %s2384_s27 = smov %s2372_s12 }
 0x226   :  { %1031 = vsyncpa [#allocation5], 1 }
 0x227   :  { %1033 = vsyncpa [#allocation5 + $0x1], 1 }
 0x228   :  { %1034 = vsyncpa [#allocation8], 1 }
 0x229   :  { %1036 = vsyncpa [#allocation8 + $0x1], 1 }
 0x22a   :  { %1037 = vsyncpa [#allocation6], 1 }
 0x22b   :  { %1039 = vsyncpa [#allocation6 + $0x1], 1 }

</bundles_post_ra>
